<compile_context>
chip_gen: v5e
topology: v5e:2x2
jax: 0.10.0
libtpu: 0.0.40
codegen_flags: <defaults>
</compile_context>

<pallas_src>
import math

import jax
import jax.numpy as jnp
from jax import lax
from jax.experimental import pallas as pl
from jax.experimental.pallas import tpu as pltpu

# ----------------------------- configuration -------------------------------
B = 2            # batch
S = 8            # sequence length
H = 32           # hidden_size
N_HEADS = 4      # num_attention_heads
N_KV = 4         # num_kv_heads (MHA here; GQA mapping handled explicitly)
D_HEAD = 8       # head_size
FFN = 64         # ffn_hidden_size
EPS = 1e-5       # layernorm_eps
Q_SCALING = 1.0
RESIDUAL_SCALING = 1.0
ROPE_BASE = 10000.0

T = B * S                                  # flattened token axis
QKV_OUT = (N_HEADS + 2 * N_KV) * D_HEAD    # fused QKV output width
NEG_INF = -1e9


# ------------------------------ Pallas kernel ------------------------------
def transformer_block_kernel(x_ref, ln1_ref, ln2_ref, wq_ref, wk_ref, wv_ref,
                             wo_ref, wfc_ref, wgate_ref, wdown_ref,
                             cos_ref, sin_ref, bias_ref, out_ref):
    x = x_ref[...]                 # [T, H] f32 (batch folded into rows)
    ln1 = ln1_ref[...]             # [1, H]
    ln2 = ln2_ref[...]             # [1, H]
    cos = cos_ref[...]             # [T, D_HEAD]
    sin_signed = sin_ref[...]      # [T, D_HEAD] (rotate-half sign pre-folded)
    bias = bias_ref[...]           # [T, T] block-diagonal causal additive bias

    def rmsnorm(v, w):
        var = jnp.mean(v * v, axis=-1, keepdims=True)
        return v * lax.rsqrt(var + EPS) * w

    # ---- input layernorm + head-batched QKV projection --------------------
    residual1 = x * RESIDUAL_SCALING
    h1 = rmsnorm(x, ln1)
    h1b = jnp.broadcast_to(h1.astype(jnp.bfloat16)[None], (N_HEADS, T, H))

    def head_proj(w_ref):          # [NH,T,H] @ [NH,H,D] -> [NH,T,D]
        return jnp.einsum('nth,nhd->ntd', h1b, w_ref[...],
                          preferred_element_type=jnp.float32)

    q = head_proj(wq_ref)          # 1/(q_scaling*sqrt(d)) already folded in wq
    k = head_proj(wk_ref)
    v = head_proj(wv_ref)

    # ---- GPT-NeoX RoPE, one pass over all heads ----------------------------
    half = D_HEAD // 2

    def rope(t):                   # t: [NH, T, D_HEAD]
        rot = jnp.concatenate([t[..., half:], t[..., :half]], axis=-1)
        return t * cos[None] + rot * sin_signed[None]

    q = rope(q).astype(jnp.bfloat16)
    k = rope(k).astype(jnp.bfloat16)

    # ---- causal attention (heads batched, batch folded via block-diag bias)
    s = jnp.einsum('ntd,nkd->ntk', q, k,
                   preferred_element_type=jnp.float32)       # [NH, T, T]
    s = s + bias[None]
    m = jnp.max(s, axis=-1, keepdims=True)
    p = jnp.exp(s - m)
    denom = jnp.sum(p, axis=-1, keepdims=True)
    p = p * pl.reciprocal(denom, approx=True)

    o = jnp.einsum('ntk,nkd->ntd', p.astype(jnp.bfloat16),
                   v.astype(jnp.bfloat16),
                   preferred_element_type=jnp.float32)        # [NH, T, D]

    # output projection: per-head partials summed over heads (no concat)
    attn_out = jnp.einsum('ntd,ndh->nth', o.astype(jnp.bfloat16), wo_ref[...],
                          preferred_element_type=jnp.float32).sum(axis=0)

    x2 = residual1 + attn_out

    # ---- post layernorm + GatedMLP (gated-silu) ----------------------------
    residual2 = x2 * RESIDUAL_SCALING
    h2 = rmsnorm(x2, ln2).astype(jnp.bfloat16)
    fc = jnp.dot(h2, wfc_ref[...], preferred_element_type=jnp.float32)
    gate = jnp.dot(h2, wgate_ref[...], preferred_element_type=jnp.float32)
    inter = (fc * jax.nn.sigmoid(fc)) * gate                  # silu(fc) * gate
    mlp_out = jnp.dot(inter.astype(jnp.bfloat16), wdown_ref[...],
                      preferred_element_type=jnp.float32)

    out_ref[...] = residual2 + mlp_out


# ----------------------- host-side parameter restructuring ------------------
def _prepare_kernel_params(params):
    wqkv = params["wqkv"]                       # [H, QKV_OUT]
    scale = 1.0 / (Q_SCALING * math.sqrt(D_HEAD))
    group = N_HEADS // N_KV                     # explicit GQA head->kv mapping

    q_cols = wqkv[:, :N_HEADS * D_HEAD] * scale
    k_cols = wqkv[:, N_HEADS * D_HEAD:(N_HEADS + N_KV) * D_HEAD]
    v_cols = wqkv[:, (N_HEADS + N_KV) * D_HEAD:]

    wq = jnp.stack([q_cols[:, h * D_HEAD:(h + 1) * D_HEAD]
                    for h in range(N_HEADS)], axis=0)                  # [NH,H,D]
    wk = jnp.stack([k_cols[:, (h // group) * D_HEAD:((h // group) + 1) * D_HEAD]
                    for h in range(N_HEADS)], axis=0)                  # [NH,H,D]
    wv = jnp.stack([v_cols[:, (h // group) * D_HEAD:((h // group) + 1) * D_HEAD]
                    for h in range(N_HEADS)], axis=0)                  # [NH,H,D]
    wo_h = params["wo"].reshape(N_HEADS, D_HEAD, H)                    # [NH,D,H]

    # RoPE tables tiled over batch rows; fold the rotate-half sign into sin.
    half = D_HEAD // 2
    cos, sin = params["cos"], params["sin"]                            # [S, D]
    sin_signed = jnp.concatenate([-sin[:, :half], sin[:, half:]], axis=-1)
    cos_t = jnp.tile(cos, (B, 1))                                      # [T, D]
    sin_t = jnp.tile(sin_signed, (B, 1))                               # [T, D]

    # Block-diagonal causal additive bias over the flattened batch*seq axis.
    t = jnp.arange(T)
    same_batch = (t[:, None] // S) == (t[None, :] // S)
    causal = (t[None, :] % S) <= (t[:, None] % S)
    bias = jnp.where(same_batch & causal, 0.0, NEG_INF).astype(jnp.float32)

    bf = lambda a: a.astype(jnp.bfloat16)
    return dict(
        ln1=params["ln1"], ln2=params["ln2"],
        wq=bf(wq), wk=bf(wk), wv=bf(wv), wo=bf(wo_h),
        wfc=bf(params["wfc"]), wgate=bf(params["wgate"]),
        wdown=bf(params["wdown"]),
        cos=cos_t, sin=sin_t, bias=bias)


def transformer_block(x, params):
    """x: [B, S, H] float32. params: dict of weights (see _init_params)."""
    kp = _prepare_kernel_params(params)
    x2d = x.reshape(T, H)                       # wrapper-side layout plumbing

    out2d = pl.pallas_call(
        transformer_block_kernel,
        out_shape=jax.ShapeDtypeStruct((T, H), jnp.float32),
    )(x2d, kp["ln1"], kp["ln2"], kp["wq"], kp["wk"], kp["wv"], kp["wo"],
      kp["wfc"], kp["wgate"], kp["wdown"], kp["cos"], kp["sin"], kp["bias"])

    return out2d.reshape(B, S, H)


# --------------------------- reference (plain JAX) --------------------------
def reference_block(x, params):
    ln1, wqkv, wo, ln2, wfc, wgate, wdown, cos, sin = (
        params["ln1"], params["wqkv"], params["wo"], params["ln2"],
        params["wfc"], params["wgate"], params["wdown"],
        params["cos"], params["sin"])

    def rmsnorm(v, w):
        var = jnp.mean(v * v, axis=-1, keepdims=True)
        return v * lax.rsqrt(var + EPS) * w

    def rope(t):  # [B, S, nh, d]
        half = D_HEAD // 2
        rot = jnp.concatenate([-t[..., half:], t[..., :half]], axis=-1)
        return t * cos[None, :, None, :] + rot * sin[None, :, None, :]

    residual1 = x * RESIDUAL_SCALING
    h1 = rmsnorm(x, ln1)
    qkv = h1 @ wqkv
    q = qkv[..., :N_HEADS * D_HEAD].reshape(B, S, N_HEADS, D_HEAD)
    k = qkv[..., N_HEADS * D_HEAD:(N_HEADS + N_KV) * D_HEAD].reshape(B, S, N_KV, D_HEAD)
    v = qkv[..., (N_HEADS + N_KV) * D_HEAD:].reshape(B, S, N_KV, D_HEAD)
    q, k = rope(q), rope(k)
    scale = 1.0 / (Q_SCALING * math.sqrt(D_HEAD))
    s = jnp.einsum("bqhd,bkhd->bhqk", q, k) * scale
    mask = jnp.tril(jnp.ones((S, S), dtype=bool))
    s = jnp.where(mask[None, None], s, NEG_INF)
    p = jax.nn.softmax(s, axis=-1)
    o = jnp.einsum("bhqk,bkhd->bqhd", p, v).reshape(B, S, N_HEADS * D_HEAD)
    attn_out = o @ wo
    x2 = residual1 + attn_out

    residual2 = x2 * RESIDUAL_SCALING
    h2 = rmsnorm(x2, ln2)
    inter = jax.nn.silu(h2 @ wfc) * (h2 @ wgate)
    return residual2 + inter @ wdown


# ------------------------------ param init ----------------------------------
def _init_params(key):
    ks = jax.random.split(key, 6)
    inv_freq = 1.0 / (ROPE_BASE ** (jnp.arange(0, D_HEAD, 2, dtype=jnp.float32) / D_HEAD))
    pos = jnp.arange(S, dtype=jnp.float32)
    freqs = pos[:, None] * inv_freq[None, :]          # [S, half]
    emb = jnp.concatenate([freqs, freqs], axis=-1)    # [S, D_HEAD]
    return {
        "ln1": jnp.ones((1, H), jnp.float32),
        "ln2": jnp.ones((1, H), jnp.float32),
        "wqkv": 0.05 * jax.random.normal(ks[0], (H, QKV_OUT), jnp.float32),
        "wo": 0.05 * jax.random.normal(ks[1], (N_HEADS * D_HEAD, H), jnp.float32),
        "wfc": 0.05 * jax.random.normal(ks[2], (H, FFN), jnp.float32),
        "wgate": 0.05 * jax.random.normal(ks[3], (H, FFN), jnp.float32),
        "wdown": 0.05 * jax.random.normal(ks[4], (FFN, H), jnp.float32),
        "cos": jnp.cos(emb),
        "sin": jnp.sin(emb),
    }


if __name__ == "__main__":
    key = jax.random.PRNGKey(0)
    k_x, k_p = jax.random.split(key)
    x = jax.random.normal(k_x, (B, S, H), jnp.float32)
    params = _init_params(k_p)

    out = jax.block_until_ready(transformer_block(x, params))
    ref = reference_block(x, params)

    assert out.shape == (B, S, H)
    assert bool(jnp.all(jnp.isfinite(out)))
    assert bool(jnp.allclose(out, ref, rtol=2e-2, atol=2e-2)), "mismatch vs reference"
    print("KERNEL_OK")
</pallas_src>

<mosaic_0001>
module attributes {stable_mosaic.version = 11 : i64} {
  func.func @transformer_block_kernel(%arg0: memref<16x32xf32, #tpu.memory_space<vmem>>, %arg1: memref<1x32xf32, #tpu.memory_space<vmem>>, %arg2: memref<1x32xf32, #tpu.memory_space<vmem>>, %arg3: memref<4x32x8xbf16, #tpu.memory_space<vmem>>, %arg4: memref<4x32x8xbf16, #tpu.memory_space<vmem>>, %arg5: memref<4x32x8xbf16, #tpu.memory_space<vmem>>, %arg6: memref<4x8x32xbf16, #tpu.memory_space<vmem>>, %arg7: memref<32x64xbf16, #tpu.memory_space<vmem>>, %arg8: memref<32x64xbf16, #tpu.memory_space<vmem>>, %arg9: memref<64x32xbf16, #tpu.memory_space<vmem>>, %arg10: memref<16x8xf32, #tpu.memory_space<vmem>>, %arg11: memref<16x8xf32, #tpu.memory_space<vmem>>, %arg12: memref<16x16xf32, #tpu.memory_space<vmem>>, %arg13: memref<16x32xf32, #tpu.memory_space<vmem>>) attributes {dimension_semantics = [], scalar_prefetch = 0 : i64, scratch_operands = 0 : i64, tpu.core_type = #tpu.core_type<tc>} {
    %c0 = arith.constant 0 : index
    %c0_0 = arith.constant 0 : index
    %0 = vector.load %arg0[%c0, %c0_0] : memref<16x32xf32, #tpu.memory_space<vmem>>, vector<16x32xf32>
    %c0_1 = arith.constant 0 : index
    %c0_2 = arith.constant 0 : index
    %1 = vector.load %arg1[%c0_1, %c0_2] : memref<1x32xf32, #tpu.memory_space<vmem>>, vector<1x32xf32>
    %c0_3 = arith.constant 0 : index
    %c0_4 = arith.constant 0 : index
    %2 = vector.load %arg2[%c0_3, %c0_4] : memref<1x32xf32, #tpu.memory_space<vmem>>, vector<1x32xf32>
    %c0_5 = arith.constant 0 : index
    %c0_6 = arith.constant 0 : index
    %3 = vector.load %arg10[%c0_5, %c0_6] : memref<16x8xf32, #tpu.memory_space<vmem>>, vector<16x8xf32>
    %c0_7 = arith.constant 0 : index
    %c0_8 = arith.constant 0 : index
    %4 = vector.load %arg11[%c0_7, %c0_8] : memref<16x8xf32, #tpu.memory_space<vmem>>, vector<16x8xf32>
    %c0_9 = arith.constant 0 : index
    %c0_10 = arith.constant 0 : index
    %5 = vector.load %arg12[%c0_9, %c0_10] : memref<16x16xf32, #tpu.memory_space<vmem>>, vector<16x16xf32>
    %cst = arith.constant 1.000000e+00 : f32
    %6 = vector.broadcast %cst : f32 to vector<16x32xf32>
    %7 = arith.mulf %0, %6 : vector<16x32xf32>
    %8 = arith.mulf %0, %0 : vector<16x32xf32>
    %cst_11 = arith.constant dense<0.000000e+00> : vector<16xf32>
    %9 = vector.multi_reduction <add>, %8, %cst_11 [1] : vector<16x32xf32> to vector<16xf32>
    %10 = vector.shape_cast %9 : vector<16xf32> to vector<16x1xf32>
    %cst_12 = arith.constant 3.200000e+01 : f32
    %11 = vector.broadcast %cst_12 : f32 to vector<16x1xf32>
    %12 = arith.divf %10, %11 : vector<16x1xf32>
    %cst_13 = arith.constant 9.99999974E-6 : f32
    %13 = vector.broadcast %cst_13 : f32 to vector<16x1xf32>
    %14 = arith.addf %12, %13 : vector<16x1xf32>
    %15 = math.rsqrt %14 : vector<16x1xf32>
    %16 = vector.broadcast %15 : vector<16x1xf32> to vector<16x32xf32>
    %17 = arith.mulf %0, %16 : vector<16x32xf32>
    %18 = vector.broadcast %1 : vector<1x32xf32> to vector<16x32xf32>
    %19 = arith.mulf %17, %18 : vector<16x32xf32>
    %20 = arith.truncf %19 : vector<16x32xf32> to vector<16x32xbf16>
    %21 = vector.shape_cast %20 : vector<16x32xbf16> to vector<1x16x32xbf16>
    %22 = vector.shape_cast %21 : vector<1x16x32xbf16> to vector<1x16x32xbf16>
    %23 = vector.broadcast %22 : vector<1x16x32xbf16> to vector<4x16x32xbf16>
    %c0_14 = arith.constant 0 : index
    %c0_15 = arith.constant 0 : index
    %c0_16 = arith.constant 0 : index
    %24 = vector.load %arg3[%c0_14, %c0_15, %c0_16] : memref<4x32x8xbf16, #tpu.memory_space<vmem>>, vector<4x32x8xbf16>
    "tpu.trace_start"() <{level = 10 : i32, message = "nth,nhd->ntd"}> : () -> ()
    %cst_17 = arith.constant dense<0.000000e+00> : vector<4x16x8xf32>
    %25 = tpu.matmul %23, %24, %cst_17 {dimension_numbers = #tpu.dot_dimension_numbers<[2], [1], [1], [2], [0, 0, 0, 1, 1, 2], [0], [0]>} : vector<4x16x32xbf16>, vector<4x32x8xbf16>, vector<4x16x8xf32> -> vector<4x16x8xf32>
    "tpu.trace_stop"() : () -> ()
    %c0_18 = arith.constant 0 : index
    %c0_19 = arith.constant 0 : index
    %c0_20 = arith.constant 0 : index
    %26 = vector.load %arg4[%c0_18, %c0_19, %c0_20] : memref<4x32x8xbf16, #tpu.memory_space<vmem>>, vector<4x32x8xbf16>
    "tpu.trace_start"() <{level = 10 : i32, message = "nth,nhd->ntd"}> : () -> ()
    %cst_21 = arith.constant dense<0.000000e+00> : vector<4x16x8xf32>
    %27 = tpu.matmul %23, %26, %cst_21 {dimension_numbers = #tpu.dot_dimension_numbers<[2], [1], [1], [2], [0, 0, 0, 1, 1, 2], [0], [0]>} : vector<4x16x32xbf16>, vector<4x32x8xbf16>, vector<4x16x8xf32> -> vector<4x16x8xf32>
    "tpu.trace_stop"() : () -> ()
    %c0_22 = arith.constant 0 : index
    %c0_23 = arith.constant 0 : index
    %c0_24 = arith.constant 0 : index
    %28 = vector.load %arg5[%c0_22, %c0_23, %c0_24] : memref<4x32x8xbf16, #tpu.memory_space<vmem>>, vector<4x32x8xbf16>
    "tpu.trace_start"() <{level = 10 : i32, message = "nth,nhd->ntd"}> : () -> ()
    %cst_25 = arith.constant dense<0.000000e+00> : vector<4x16x8xf32>
    %29 = tpu.matmul %23, %28, %cst_25 {dimension_numbers = #tpu.dot_dimension_numbers<[2], [1], [1], [2], [0, 0, 0, 1, 1, 2], [0], [0]>} : vector<4x16x32xbf16>, vector<4x32x8xbf16>, vector<4x16x8xf32> -> vector<4x16x8xf32>
    "tpu.trace_stop"() : () -> ()
    %30 = vector.extract_strided_slice %25 {offsets = [0, 0, 4], sizes = [4, 16, 4], strides = [1, 1, 1]} : vector<4x16x8xf32> to vector<4x16x4xf32>
    %31 = vector.extract_strided_slice %25 {offsets = [0, 0, 0], sizes = [4, 16, 4], strides = [1, 1, 1]} : vector<4x16x8xf32> to vector<4x16x4xf32>
    %32 = tpu.concatenate %30, %31 in 2 : vector<4x16x4xf32>, vector<4x16x4xf32> -> vector<4x16x8xf32>
    %33 = vector.shape_cast %3 : vector<16x8xf32> to vector<1x16x8xf32>
    %34 = vector.broadcast %33 : vector<1x16x8xf32> to vector<4x16x8xf32>
    %35 = arith.mulf %25, %34 : vector<4x16x8xf32>
    %36 = vector.shape_cast %4 : vector<16x8xf32> to vector<1x16x8xf32>
    %37 = vector.broadcast %36 : vector<1x16x8xf32> to vector<4x16x8xf32>
    %38 = arith.mulf %32, %37 : vector<4x16x8xf32>
    %39 = arith.addf %35, %38 : vector<4x16x8xf32>
    %40 = arith.truncf %39 : vector<4x16x8xf32> to vector<4x16x8xbf16>
    %41 = vector.extract_strided_slice %27 {offsets = [0, 0, 4], sizes = [4, 16, 4], strides = [1, 1, 1]} : vector<4x16x8xf32> to vector<4x16x4xf32>
    %42 = vector.extract_strided_slice %27 {offsets = [0, 0, 0], sizes = [4, 16, 4], strides = [1, 1, 1]} : vector<4x16x8xf32> to vector<4x16x4xf32>
    %43 = tpu.concatenate %41, %42 in 2 : vector<4x16x4xf32>, vector<4x16x4xf32> -> vector<4x16x8xf32>
    %44 = vector.shape_cast %3 : vector<16x8xf32> to vector<1x16x8xf32>
    %45 = vector.broadcast %44 : vector<1x16x8xf32> to vector<4x16x8xf32>
    %46 = arith.mulf %27, %45 : vector<4x16x8xf32>
    %47 = vector.shape_cast %4 : vector<16x8xf32> to vector<1x16x8xf32>
    %48 = vector.broadcast %47 : vector<1x16x8xf32> to vector<4x16x8xf32>
    %49 = arith.mulf %43, %48 : vector<4x16x8xf32>
    %50 = arith.addf %46, %49 : vector<4x16x8xf32>
    %51 = arith.truncf %50 : vector<4x16x8xf32> to vector<4x16x8xbf16>
    "tpu.trace_start"() <{level = 10 : i32, message = "ntd,nkd->ntk"}> : () -> ()
    %cst_26 = arith.constant dense<0.000000e+00> : vector<4x16x16xf32>
    %52 = tpu.matmul %40, %51, %cst_26 {dimension_numbers = #tpu.dot_dimension_numbers<[2], [2], [1], [1], [0, 0, 0, 1, 1, 1], [0], [0]>} : vector<4x16x8xbf16>, vector<4x16x8xbf16>, vector<4x16x16xf32> -> vector<4x16x16xf32>
    "tpu.trace_stop"() : () -> ()
    %53 = vector.shape_cast %5 : vector<16x16xf32> to vector<1x16x16xf32>
    %54 = vector.broadcast %53 : vector<1x16x16xf32> to vector<4x16x16xf32>
    %55 = arith.addf %52, %54 : vector<4x16x16xf32>
    %cst_27 = arith.constant dense<0xFF800000> : vector<4x16xf32>
    %56 = vector.multi_reduction <maximumf>, %55, %cst_27 [2] : vector<4x16x16xf32> to vector<4x16xf32>
    %57 = vector.shape_cast %56 : vector<4x16xf32> to vector<4x16x1xf32>
    %58 = vector.broadcast %57 : vector<4x16x1xf32> to vector<4x16x16xf32>
    %59 = arith.subf %55, %58 : vector<4x16x16xf32>
    %60 = math.exp %59 : vector<4x16x16xf32>
    %cst_28 = arith.constant dense<0.000000e+00> : vector<4x16xf32>
    %61 = vector.multi_reduction <add>, %60, %cst_28 [2] : vector<4x16x16xf32> to vector<4x16xf32>
    %62 = vector.shape_cast %61 : vector<4x16xf32> to vector<4x16x1xf32>
    %63 = tpu.reciprocal %62 {approx = true} : vector<4x16x1xf32> -> vector<4x16x1xf32>
    %64 = vector.broadcast %63 : vector<4x16x1xf32> to vector<4x16x16xf32>
    %65 = arith.mulf %60, %64 : vector<4x16x16xf32>
    %66 = arith.truncf %65 : vector<4x16x16xf32> to vector<4x16x16xbf16>
    %67 = arith.truncf %29 : vector<4x16x8xf32> to vector<4x16x8xbf16>
    "tpu.trace_start"() <{level = 10 : i32, message = "ntk,nkd->ntd"}> : () -> ()
    %cst_29 = arith.constant dense<0.000000e+00> : vector<4x16x8xf32>
    %68 = tpu.matmul %66, %67, %cst_29 {dimension_numbers = #tpu.dot_dimension_numbers<[2], [1], [1], [2], [0, 0, 0, 1, 1, 2], [0], [0]>} : vector<4x16x16xbf16>, vector<4x16x8xbf16>, vector<4x16x8xf32> -> vector<4x16x8xf32>
    "tpu.trace_stop"() : () -> ()
    %69 = arith.truncf %68 : vector<4x16x8xf32> to vector<4x16x8xbf16>
    %c0_30 = arith.constant 0 : index
    %c0_31 = arith.constant 0 : index
    %c0_32 = arith.constant 0 : index
    %70 = vector.load %arg6[%c0_30, %c0_31, %c0_32] : memref<4x8x32xbf16, #tpu.memory_space<vmem>>, vector<4x8x32xbf16>
    "tpu.trace_start"() <{level = 10 : i32, message = "ntd,ndh->nth"}> : () -> ()
    %cst_33 = arith.constant dense<0.000000e+00> : vector<4x16x32xf32>
    %71 = tpu.matmul %69, %70, %cst_33 {dimension_numbers = #tpu.dot_dimension_numbers<[2], [1], [1], [2], [0, 0, 0, 1, 1, 2], [0], [0]>} : vector<4x16x8xbf16>, vector<4x8x32xbf16>, vector<4x16x32xf32> -> vector<4x16x32xf32>
    "tpu.trace_stop"() : () -> ()
    %cst_34 = arith.constant dense<0.000000e+00> : vector<16x32xf32>
    %72 = vector.multi_reduction <add>, %71, %cst_34 [0] : vector<4x16x32xf32> to vector<16x32xf32>
    %73 = arith.addf %7, %72 : vector<16x32xf32>
    %cst_35 = arith.constant 1.000000e+00 : f32
    %74 = vector.broadcast %cst_35 : f32 to vector<16x32xf32>
    %75 = arith.mulf %73, %74 : vector<16x32xf32>
    %76 = arith.mulf %73, %73 : vector<16x32xf32>
    %cst_36 = arith.constant dense<0.000000e+00> : vector<16xf32>
    %77 = vector.multi_reduction <add>, %76, %cst_36 [1] : vector<16x32xf32> to vector<16xf32>
    %78 = vector.shape_cast %77 : vector<16xf32> to vector<16x1xf32>
    %cst_37 = arith.constant 3.200000e+01 : f32
    %79 = vector.broadcast %cst_37 : f32 to vector<16x1xf32>
    %80 = arith.divf %78, %79 : vector<16x1xf32>
    %cst_38 = arith.constant 9.99999974E-6 : f32
    %81 = vector.broadcast %cst_38 : f32 to vector<16x1xf32>
    %82 = arith.addf %80, %81 : vector<16x1xf32>
    %83 = math.rsqrt %82 : vector<16x1xf32>
    %84 = vector.broadcast %83 : vector<16x1xf32> to vector<16x32xf32>
    %85 = arith.mulf %73, %84 : vector<16x32xf32>
    %86 = vector.broadcast %2 : vector<1x32xf32> to vector<16x32xf32>
    %87 = arith.mulf %85, %86 : vector<16x32xf32>
    %88 = arith.truncf %87 : vector<16x32xf32> to vector<16x32xbf16>
    %c0_39 = arith.constant 0 : index
    %c0_40 = arith.constant 0 : index
    %89 = vector.load %arg7[%c0_39, %c0_40] : memref<32x64xbf16, #tpu.memory_space<vmem>>, vector<32x64xbf16>
    %cst_41 = arith.constant dense<0.000000e+00> : vector<16x64xf32>
    %90 = tpu.matmul %88, %89, %cst_41 {dimension_numbers = #tpu.dot_dimension_numbers<[1], [0], [0], [1], [0, 0, 1, 1], [], []>} : vector<16x32xbf16>, vector<32x64xbf16>, vector<16x64xf32> -> vector<16x64xf32>
    %c0_42 = arith.constant 0 : index
    %c0_43 = arith.constant 0 : index
    %91 = vector.load %arg8[%c0_42, %c0_43] : memref<32x64xbf16, #tpu.memory_space<vmem>>, vector<32x64xbf16>
    %cst_44 = arith.constant dense<0.000000e+00> : vector<16x64xf32>
    %92 = tpu.matmul %88, %91, %cst_44 {dimension_numbers = #tpu.dot_dimension_numbers<[1], [0], [0], [1], [0, 0, 1, 1], [], []>} : vector<16x32xbf16>, vector<32x64xbf16>, vector<16x64xf32> -> vector<16x64xf32>
    %93 = arith.negf %90 : vector<16x64xf32>
    %94 = math.exp %93 : vector<16x64xf32>
    %cst_45 = arith.constant 1.000000e+00 : f32
    %95 = vector.broadcast %cst_45 : f32 to vector<16x64xf32>
    %96 = arith.addf %95, %94 : vector<16x64xf32>
    %97 = arith.divf %95, %96 : vector<16x64xf32>
    %98 = arith.mulf %90, %97 : vector<16x64xf32>
    %99 = arith.mulf %98, %92 : vector<16x64xf32>
    %100 = arith.truncf %99 : vector<16x64xf32> to vector<16x64xbf16>
    %c0_46 = arith.constant 0 : index
    %c0_47 = arith.constant 0 : index
    %101 = vector.load %arg9[%c0_46, %c0_47] : memref<64x32xbf16, #tpu.memory_space<vmem>>, vector<64x32xbf16>
    %cst_48 = arith.constant dense<0.000000e+00> : vector<16x32xf32>
    %102 = tpu.matmul %100, %101, %cst_48 {dimension_numbers = #tpu.dot_dimension_numbers<[1], [0], [0], [1], [0, 0, 1, 1], [], []>} : vector<16x64xbf16>, vector<64x32xbf16>, vector<16x32xf32> -> vector<16x32xf32>
    %103 = arith.addf %75, %102 : vector<16x32xf32>
    %c0_49 = arith.constant 0 : index
    %c0_50 = arith.constant 0 : index
    %104 = vector.load %arg13[%c0_49, %c0_50] : memref<16x32xf32, #tpu.memory_space<vmem>>, vector<16x32xf32>
    tpu.vector_store %arg13[%c0_49, %c0_50], %103 {strides = array<i32>} : memref<16x32xf32, #tpu.memory_space<vmem>>, vector<16x32xf32>,
    return
  }
}

</mosaic_0001>

<bundles_post_ra>
// kernel: tpu_custom_call.1
= control target key start
LH: loop header
LB: loop body
LE: loop exit
PB: predicated region body
PF: predicated region fallthrough
CT: control target
= control target key end

     0   :  { %vm58_vm0 = vcmask 261120   ;;  %s2126_s0 = inlined_call_operand.vmem [shape: f32[16,32], index: 0, kind: input, shape index: {}]   ;;  %s2127_s1 = inlined_call_operand.vmem [shape: f32[1,32], index: 1, kind: input, shape index: {}]   ;;  %s2128_s2 = inlined_call_operand.vmem [shape: f32[1,32], index: 2, kind: input, shape index: {}]   ;;  %s2129_s3 = inlined_call_operand.vmem [shape: bf16[4,32,8], index: 3, kind: input, shape index: {}]   ;;  %s2130_s4 = inlined_call_operand.vmem [shape: bf16[4,32,8], index: 4, kind: input, shape index: {}]   ;;  %s2131_s5 = inlined_call_operand.vmem [shape: bf16[4,32,8], index: 5, kind: input, shape index: {}]   ;;  %s2132_s6 = inlined_call_operand.vmem [shape: bf16[4,8,32], index: 6, kind: input, shape index: {}]   ;;  %s2133_s7 = inlined_call_operand.vmem [shape: bf16[32,64], index: 7, kind: input, shape index: {}]   ;;  %s2134_s8 = inlined_call_operand.vmem [shape: bf16[32,64], index: 8, kind: input, shape index: {}]   ;;  %s2135_s9 = inlined_call_operand.vmem [shape: bf16[64,32], index: 9, kind: input, shape index: {}]   ;;  %s2136_s10 = inlined_call_operand.vmem [shape: f32[16,8], index: 10, kind: input, shape index: {}]   ;;  %s2137_s11 = inlined_call_operand.vmem [shape: f32[16,8], index: 11, kind: input, shape index: {}]   ;;  %s2138_s12 = inlined_call_operand.vmem [shape: f32[16,16], index: 12, kind: input, shape index: {}]   ;;  %s2139_s13 = inlined_call_operand.hbm [shape: f32[16,32], index: 13, kind: output, shape index: {}]  }
   0x1   :  { %v1705_v0 = vld [vmem:[%s2126_s0] sm:$0xff] }
   0x2   :  { %v56_v1 = vmul.f32 %v1705_v0, %v1705_v0 }
   0x3   :  { %18 = vsyncpa [#allocation3], 0  ;;  %v1712_v2 = vld [vmem:[%s2126_s0 + $0x8] sm:$0xff]  ;;  %v1626_v6 = vmov 32.0   ;;  %v1511_v15 = vld [vmem:[%s2129_s3 + $0x18] sm:$0xff]  ;;  %s1628_s24 = smov 124  }
   0x4   :  { %v59_v3 = vsel %vm58_vm0, %v56_v1, 0.0  ;;  %v57_v4 = vmul.f32 %v1712_v2, %v1712_v2  ;;  %1548 = vrcp.f32 %v1626_v6  ;;  %v1509_v14 = vld [vmem:[%s2129_s3 + $0x8] sm:$0xff]  ;;  %v1515_v18 = vld [vmem:[%s2129_s3 + $0x38] sm:$0xff]  ;;  %173 = vmatpush.bf16.msra.mxu1 %v1511_v15  ;;  %v1508_v20 = vld [vmem:[%s2129_s3] sm:$0xff]  ;;  %vm529_vm8 = vcmask 31744   ;;  %s1339_s18 = sshll.u32 %s2139_s13, 4  ;;  %s1340_s18 = int_to_ptr.hbm [resolvable:$true] %s1339_s18 }
   0x5   :  { %60 = vadd.xlane.f32.xlu0 %v59_v3  ;;  %v1513_v16 = vld [vmem:[%s2129_s3 + $0x28] sm:$0xff]  ;;  %147 = vmatpush.bf16.msra.mxu0 %v1509_v14  ;;  %v1510_v21 = vld [vmem:[%s2129_s3 + $0x10] sm:$0xff]  ;;  %v1512_v22 = vld [vmem:[%s2129_s3 + $0x20] sm:$0xff]  ;;  %vm676_vm9 = vcmask 64512   ;;  %vm787_vm10 = vcmask 130048   ;;  %vm1024_vm11 = vcmask 1043456  }
   0x6   :  { %v62_v5 = vsel %vm58_vm0, %v57_v4, 0.0  ;;  %199 = vmatpush.bf16.msra.mxu2 %v1513_v16  ;;  %225 = vmatpush.bf16.msra.mxu3 %v1515_v18  ;;  %v1514_v23 = vld [vmem:[%s2129_s3 + $0x30] sm:$0xff]  ;;  %v1517_v26 = vld [vmem:[%s2130_s4 + $0x8] sm:$0xff]  ;;  %v1519_v27 = vld [vmem:[%s2130_s4 + $0x18] sm:$0xff]  ;;  %s1630_s19 = smov 128   ;;  %s1631_s20 = smov 8  }
   0x7   :  { %v1521_v28 = vld [vmem:[%s2130_s4 + $0x28] sm:$0xff]  ;;  %v1523_v31 = vld [vmem:[%s2130_s4 + $0x38] sm:$0xff]  ;;  %v1516_v33 = vld [vmem:[%s2130_s4] sm:$0xff] }
   0x8   :  { %174 = vmatpush.bf16.msra.mxu1 %v1510_v21  ;;  %v1518_v34 = vld [vmem:[%s2130_s4 + $0x10] sm:$0xff]  ;;  %v1520_v35 = vld [vmem:[%s2130_s4 + $0x20] sm:$0xff]  ;;  %v1525_v59 = vld [vmem:[%s2131_s5 + $0x8] sm:$0xff] }
   0x9   :  { %148 = vmatpush.bf16.msra.mxu0 %v1508_v20  ;;  %v1522_v36 = vld [vmem:[%s2130_s4 + $0x30] sm:$0xff]  ;;  %v1546_v46 = vld [vmem:[%s2127_s1] ss:$0 sm:$0xff]  ;;  %v1527_v60 = vld [vmem:[%s2131_s5 + $0x18] sm:$0xff] }
   0xa   :  { %v1549_v7 = vpop.eup %1548  ;;  %200 = vmatpush.bf16.msra.mxu2 %v1512_v22  ;;  %226 = vmatpush.bf16.msra.mxu3 %v1514_v23  ;;  %v1529_v61 = vld [vmem:[%s2131_s5 + $0x28] sm:$0xff]  ;;  %v1531_v62 = vld [vmem:[%s2131_s5 + $0x38] sm:$0xff]  ;;  %v1524_v63 = vld [vmem:[%s2131_s5] sm:$0xff] }
   0xb   :  { %v66_v8 = vmul.f32 32.0, %v1549_v7  ;;  %vm70_vm1 = vweird.f32 %v1549_v7  ;;  %v1528_v1 = vld [vmem:[%s2131_s5 + $0x20] sm:$0xff] }
   0xc   :  { %293 = vmatpush.bf16.msrb.mxu1 %v1519_v27  ;;  %v1902_v21 = vld [vmem:[%s2137_s11] sm:$0xff] }
   0xd   :  { %63 = vadd.xlane.f32.xlu0 %v62_v5  ;;  %v67_v9 = vsub.f32 1.0, %v66_v8  ;;  %267 = vmatpush.bf16.msrb.mxu0 %v1517_v26  ;;  %v1907_v23 = vld [vmem:[%s2136_s10] sm:$0xff] }
   0xe   :  { %319 = vmatpush.bf16.msrb.mxu2 %v1521_v28  ;;  %345 = vmatpush.bf16.msrb.mxu3 %v1523_v31 }
   0xf   :  { %v68_v10 = vmul.f32 %v1549_v7, %v67_v9 }
  0x10   :  { %294 = vmatpush.bf16.msrb.mxu1 %v1518_v34 }
  0x11   :  { %v69_v11 = vadd.f32 %v1549_v7, %v68_v10  ;;  %268 = vmatpush.bf16.msrb.mxu0 %v1516_v33 }
  0x12   :  { %320 = vmatpush.bf16.msrb.mxu2 %v1520_v35  ;;  %346 = vmatpush.bf16.msrb.mxu3 %v1522_v36  ;;  %v1918_v36 = vld [vmem:[%s2137_s11 + $0x8] sm:$0xff] }
  0x13   :  { %v1718_v12 = vsel %vm70_vm1, %v1549_v7, %v69_v11 }
  0x78   :  { %v61_v13 = vpop.xlane.xlu0 %60 }
  0x79   :  { %v72_v17 = vmul.f32 %v1718_v12, %v61_v13 }
  0x7b   :  { %v74_v19 = vadd.f32 1e-05, %v72_v17 }
  0x7d   :  { %1550 = vrsqrt.f32 %v74_v19  ;;  %vm82_vm3 = vweird.f32 %v74_v19 }
  0x80   :  { %v64_v24 = vpop.xlane.xlu0 %63 }
  0x81   :  { %v73_v25 = vmul.f32 %v1718_v12, %v64_v24 }
  0x83   :  { %v1551_v29 = vpop.eup %1550  ;;  %v75_v30 = vadd.f32 1e-05, %v73_v25 }
  0x84   :  { %v77_v32 = vmul.f32 %v1551_v29, %v74_v19  ;;  %vm83_vm2 = vweird.f32 %v1551_v29 }
  0x85   :  { %1552 = vrsqrt.f32 %v75_v30  ;;  %vm84_vm4 = vmor %vm82_vm3, %vm83_vm2  ;;  %vm92_vm6 = vweird.f32 %v75_v30 }
  0x86   :  { %v78_v37 = vmul.f32 %v1551_v29, %v77_v32 }
  0x88   :  { %v79_v38 = vmul.f32 0.5, %v78_v37 }
  0x8a   :  { %v80_v39 = vsub.f32 1.5, %v79_v38 }
  0x8b   :  { %v1553_v40 = vpop.eup %1552 }
  0x8c   :  { %v81_v41 = vmul.f32 %v1551_v29, %v80_v39  ;;  %v87_v42 = vmul.f32 %v1553_v40, %v75_v30  ;;  %vm93_vm5 = vweird.f32 %v1553_v40  ;;  %v1923_v39 = vld [vmem:[%s2136_s10 + $0x8] sm:$0xff] }
  0x8d   :  { %vm94_vm7 = vmor %vm92_vm6, %vm93_vm5 }
  0x8e   :  { %v85_v43 = vsel %vm84_vm4, %v1551_v29, %v81_v41  ;;  %v88_v44 = vmul.f32 %v1553_v40, %v87_v42 }
  0x8f   :  { %v96_v47 = vmul.f32 %v85_v43, %v1705_v0  ;;  %v1526_v0 = vld [vmem:[%s2131_s5 + $0x10] sm:$0xff] }
  0x90   :  { %v89_v45 = vmul.f32 0.5, %v88_v44 }
  0x91   :  { %v101_v50 = vmul.f32 %v1546_v46, %v96_v47 }
  0x92   :  { %v90_v48 = vsub.f32 1.5, %v89_v45 }
  0x93   :  { %v103_v53 = vpack.c.bf16 %v101_v50, %v101_v50 }
  0x94   :  { %v91_v49 = vmul.f32 %v1553_v40, %v90_v48 }
  0x95   :  { %v123_v56 = vunpack.c.l.b16 %v103_v53 }
  0x96   :  { %v95_v51 = vsel %vm94_vm7, %v1553_v40, %v91_v49 }
  0x97   :  { %v97_v52 = vmul.f32 %v95_v51, %v1712_v2  ;;  %v1530_v2 = vld [vmem:[%s2131_s5 + $0x30] sm:$0xff]  ;;  %s1627_s5 = smov 4  }
  0x99   :  { %v102_v54 = vmul.f32 %v1546_v46, %v97_v52 }
  0x9b   :  { %v104_v55 = vpack.c.bf16 %v102_v54, %v102_v54 }
  0x9d   :  { %v124_v57 = vunpack.c.l.b16 %v104_v55 }
  0x9f   :  { %v125_v58 = vpack.c.b16 %v124_v57, %v123_v56 }
  0xa1   :  { %1359 = vmatmul.msk.bf16.vlgmr.msra.gmra.mxu0 %vm58_vm0, %v125_v58  ;;  %1368 = vmatmul.msk.bf16.vlgmr.msra.gmra.mxu1 %vm58_vm0, %v125_v58 }
  0xa2   :  { %1377 = vmatmul.msk.bf16.vlgmr.msra.gmra.mxu2 %vm58_vm0, %v125_v58  ;;  %1386 = vmatmul.msk.bf16.vlgmr.msra.gmra.mxu3 %vm58_vm0, %v125_v58 }
  0xa3   :  { %387 = vmatpush.bf16.msra.mxu0 %v1525_v59  ;;  %413 = vmatpush.bf16.msra.mxu1 %v1527_v60 }
  0xa4   :  { %439 = vmatpush.bf16.msra.mxu2 %v1529_v61  ;;  %465 = vmatpush.bf16.msra.mxu3 %v1531_v62 }
  0xa7   :  { %388 = vmatpush.bf16.msra.mxu0 %v1524_v63  ;;  %414 = vmatpush.bf16.msra.mxu1 %v1526_v0 }
  0xa8   :  { %440 = vmatpush.bf16.msra.mxu2 %v1528_v1  ;;  %466 = vmatpush.bf16.msra.mxu3 %v1530_v2 }
  0xb1   :  { %1395 = vmatmul.msk.bf16.vlgmr.msrb.gmra.mxu0 %vm58_vm0, %v125_v58  ;;  %1404 = vmatmul.msk.bf16.vlgmr.msrb.gmra.mxu1 %vm58_vm0, %v125_v58 }
  0xb2   :  { %1413 = vmatmul.msk.bf16.vlgmr.msrb.gmra.mxu2 %vm58_vm0, %v125_v58  ;;  %1422 = vmatmul.msk.bf16.vlgmr.msrb.gmra.mxu3 %vm58_vm0, %v125_v58 }
  0xc1   :  { %1431 = vmatmul.msk.bf16.vlgmr.msra.gmra.mxu0 %vm58_vm0, %v125_v58  ;;  %1440 = vmatmul.msk.bf16.vlgmr.msra.gmra.mxu1 %vm58_vm0, %v125_v58 }
  0xc2   :  { %1449 = vmatmul.msk.bf16.vlgmr.msra.gmra.mxu2 %vm58_vm0, %v125_v58  ;;  %1458 = vmatmul.msk.bf16.vlgmr.msra.gmra.mxu3 %vm58_vm0, %v125_v58 }
 0x11e   :  { %v1811_v3 = vpop.f32.mrf.mxu0  ;;  %v1816_v6 = vpop.f32.mrf.mxu1 }
 0x125   :  { %v202_v4 = vpop.f32.mrf.mxu2  ;;  %v228_v5 = vpop.f32.mrf.mxu3 }
 0x126   :  { %517 = vrot.lane.b32.xlu0 %v228_v5, %s1627_s5  ;;  %493 = vrot.lane.b32.xlu1 %v228_v5, %s1628_s24  ;;  %v1818_v7 = vpop.f32.mrf.mxu0  ;;  %v1827_v9 = vpop.f32.mrf.mxu1  ;;  %v542_v25 = vmul.f32 %v202_v4, %v1907_v23  ;;  %v544_v33 = vmul.f32 %v228_v5, %v1907_v23 }
 0x127   :  { %489 = vrot.lane.b32.xlu2 %v202_v4, %s1628_s24 }
 0x12d   :  { %v1820_v8 = vpop.f32.mrf.mxu2  ;;  %v1829_v10 = vpop.f32.mrf.mxu3 }
 0x12e   :  { %515 = vrot.lane.b32.xlu0 %v1820_v8, %s1627_s5  ;;  %491 = vrot.lane.b32.xlu1 %v1820_v8, %s1628_s24  ;;  %v1831_v11 = vpop.f32.mrf.mxu0  ;;  %v1839_v13 = vpop.f32.mrf.mxu1  ;;  %v543_v42 = vmul.f32 %v1820_v8, %v1923_v39  ;;  %v545_v52 = vmul.f32 %v1829_v10, %v1923_v39 }
 0x12f   :  { %513 = vrot.lane.b32.xlu2 %v202_v4, %s1627_s5 }
 0x135   :  { %v1841_v14 = vpop.f32.mrf.mxu3  ;;  %v1849_v15 = vpop.f32.mrf.mxu2 }
 0x136   :  { %519 = vrot.lane.b32.xlu1 %v1829_v10, %s1627_s5  ;;  %602 = vrot.lane.b32.xlu0 %v1831_v11, %s1627_s5  ;;  %v1851_v16 = vpop.f32.mrf.mxu0  ;;  %v1859_v17 = vpop.f32.mrf.mxu1 }
 0x137   :  { %495 = vrot.lane.b32.xlu2 %v1829_v10, %s1628_s24 }
 0x13d   :  { %v1867_v18 = vpop.f32.mrf.mxu2  ;;  %v1875_v19 = vpop.f32.mrf.mxu3 }
 0x13e   :  { %582 = vrot.lane.b32.xlu1 %v1839_v13, %s1628_s24  ;;  %590 = vrot.lane.b32.xlu0 %v1841_v14, %s1628_s24  ;;  %v390_v1 = vpop.f32.mrf.mxu0  ;;  %v416_v2 = vpop.f32.mrf.mxu1 }
 0x13f   :  { %578 = vrot.lane.b32.xlu2 %v1831_v11, %s1628_s24 }
 0x146   :  { %586 = vrot.lane.b32.xlu1 %v1849_v15, %s1628_s24  ;;  %580 = vrot.lane.b32.xlu0 %v1851_v16, %s1628_s24 }
 0x147   :  { %606 = vrot.lane.b32.xlu2 %v1839_v13, %s1627_s5 }
 0x14e   :  { %604 = vrot.lane.b32.xlu1 %v1851_v16, %s1627_s5  ;;  %608 = vrot.lane.b32.xlu0 %v1859_v17, %s1627_s5 }
 0x14f   :  { %610 = vrot.lane.b32.xlu2 %v1849_v15, %s1627_s5 }
 0x156   :  { %588 = vrot.lane.b32.xlu1 %v1867_v18, %s1628_s24  ;;  %485 = vrot.lane.b32.xlu0 %v1816_v6, %s1628_s24 }
 0x157   :  { %614 = vrot.lane.b32.xlu2 %v1841_v14, %s1627_s5 }
 0x15e   :  { %592 = vrot.lane.b32.xlu1 %v1875_v19, %s1628_s24  ;;  %507 = vrot.lane.b32.xlu0 %v1818_v7, %s1627_s5 }
 0x15f   :  { %584 = vrot.lane.b32.xlu2 %v1859_v17, %s1628_s24 }
 0x166   :  { %616 = vrot.lane.b32.xlu1 %v1875_v19, %s1627_s5 }
 0x167   :  { %612 = vrot.lane.b32.xlu2 %v1867_v18, %s1627_s5 }
 0x16e   :  { %481 = vrot.lane.b32.xlu1 %v1811_v3, %s1628_s24 }
 0x16f   :  { %483 = vrot.lane.b32.xlu2 %v1818_v7, %s1628_s24 }
 0x176   :  { %487 = vrot.lane.b32.xlu1 %v1827_v9, %s1628_s24 }
 0x177   :  { %505 = vrot.lane.b32.xlu2 %v1811_v3, %s1627_s5 }
 0x17e   :  { %509 = vrot.lane.b32.xlu1 %v1816_v6, %s1627_s5 }
 0x17f   :  { %511 = vrot.lane.b32.xlu2 %v1827_v9, %s1627_s5 }
 0x181   :  { %v490_v20 = vpop.permute.xlu2 %489 }
 0x189   :  { %v514_v22 = vpop.permute.xlu2 %513 }
 0x18a   :  { %v534_v24 = vsel %vm529_vm8, %v490_v20, %v514_v22 }
 0x18b   :  { %v550_v26 = vmul.f32 %v534_v24, %v1902_v21  ;;  %v634_v24 = vmul.f32 %v1831_v11, %v1907_v23  ;;  %v635_v11 = vmul.f32 %v1851_v16, %v1923_v39  ;;  %v638_v16 = vmul.f32 %v1849_v15, %v1907_v23 }
 0x18c   :  { %v639_v15 = vmul.f32 %v1867_v18, %v1923_v39 }
 0x18d   :  { %v558_v27 = vadd.f32 %v550_v26, %v542_v25  ;;  %v1955_v25 = vpop.f32.mrf.mxu2  ;;  %v636_v26 = vmul.f32 %v1839_v13, %v1907_v23 }
 0x18e   :  { %v888_v18 = vpack.c.bf16 %v1955_v25, %v1955_v25 }
 0x18f   :  { %v566_v44 = vpack.c.bf16 %v558_v27, %v558_v27 }
 0x191   :  { %v496_v28 = vpop.permute.xlu2 %495  ;;  %v1929_v47 = vunpack.c.l.b16 %v566_v44 }
 0x198   :  { %v518_v29 = vpop.permute.xlu0 %517  ;;  %v494_v30 = vpop.permute.xlu1 %493 }
 0x199   :  { %v536_v31 = vsel %vm529_vm8, %v494_v30, %v518_v29  ;;  %v579_v32 = vpop.permute.xlu2 %578  ;;  %v418_v29 = vpop.f32.mrf.mxu1 }
 0x19a   :  { %v552_v34 = vmul.f32 %v536_v31, %v1902_v21 }
 0x19c   :  { %v560_v35 = vadd.f32 %v552_v34, %v544_v33 }
 0x19e   :  { %v568_v56 = vpack.c.bf16 %v560_v35, %v560_v35 }
 0x1a0   :  { %v516_v37 = vpop.permute.xlu0 %515  ;;  %v492_v38 = vpop.permute.xlu1 %491  ;;  %v1939_v59 = vunpack.c.l.b16 %v568_v56 }
 0x1a1   :  { %v535_v40 = vsel %vm529_vm8, %v492_v38, %v516_v37  ;;  %v607_v41 = vpop.permute.xlu2 %606  ;;  %v637_v38 = vmul.f32 %v1859_v17, %v1923_v39  ;;  %v444_v56 = vpop.f32.mrf.mxu2 }
 0x1a2   :  { %v551_v43 = vmul.f32 %v535_v40, %v1918_v36 }
 0x1a4   :  { %v559_v45 = vadd.f32 %v551_v43, %v543_v42  ;;  %v887_v42 = vpack.c.bf16 %v418_v29, %v418_v29  ;;  %v889_v29 = vpack.c.bf16 %v444_v56, %v444_v56 }
 0x1a6   :  { %v567_v46 = vpack.c.bf16 %v559_v45, %v559_v45 }
 0x1a8   :  { %v1931_v48 = vunpack.c.l.b16 %v567_v46  ;;  %v520_v49 = vpop.permute.xlu1 %519  ;;  %v603_v50 = vpop.permute.xlu0 %602 }
 0x1a9   :  { %v537_v51 = vsel %vm529_vm8, %v496_v28, %v520_v49  ;;  %v611_v55 = vpop.permute.xlu2 %610  ;;  %v626_v4 = vsel %vm529_vm8, %v579_v32, %v603_v50  ;;  %v392_v28 = vpop.f32.mrf.mxu0  ;;  %v884_v50 = vpack.c.bf16 %v390_v1, %v390_v1 }
 0x1aa   :  { %v731_v53 = vpack.c.b16 %v1931_v48, %v1929_v47  ;;  %v553_v54 = vmul.f32 %v537_v51, %v1918_v36  ;;  %v642_v20 = vmul.f32 %v626_v4, %v1902_v21  ;;  %v886_v51 = vpack.c.bf16 %v416_v2, %v416_v2 }
 0x1ac   :  { %v561_v57 = vadd.f32 %v553_v54, %v545_v52  ;;  %v650_v30 = vadd.f32 %v642_v20, %v634_v24  ;;  %v899_v20 = vunpack.c.l.b16 %v884_v50 }
 0x1ae   :  { %v569_v58 = vpack.c.bf16 %v561_v57, %v561_v57  ;;  %v658_v43 = vpack.c.bf16 %v650_v30, %v650_v30 }
 0x1b0   :  { %v1941_v60 = vunpack.c.l.b16 %v569_v58  ;;  %v583_v61 = vpop.permute.xlu1 %582  ;;  %v1943_v62 = vpop.permute.xlu0 %590  ;;  %v673_v57 = vunpack.c.l.b16 %v658_v43 }
 0x1b1   :  { %v1947_v0 = vpop.permute.xlu2 %614  ;;  %v628_v10 = vsel %vm529_vm8, %v583_v61, %v607_v41  ;;  %v885_v41 = vpack.c.bf16 %v392_v28, %v392_v28 }
 0x1b2   :  { %v761_v63 = vpack.c.b16 %v1941_v60, %v1939_v59  ;;  %v644_v22 = vmul.f32 %v628_v10, %v1902_v21 }
 0x1b3   :  { %v900_v17 = vunpack.c.l.b16 %v885_v41  ;;  %v632_v41 = vsel %vm529_vm8, %v1943_v62, %v1947_v0  ;;  %v641_v0 = vmul.f32 %v1875_v19, %v1923_v39 }
 0x1b4   :  { %v652_v31 = vadd.f32 %v644_v22, %v636_v26  ;;  %v927_v22 = vunpack.c.l.b16 %v886_v51 }
 0x1b6   :  { %v660_v44 = vpack.c.bf16 %v652_v31, %v652_v31 }
 0x1b8   :  { %v587_v5 = vpop.permute.xlu1 %586  ;;  %v581_v8 = vpop.permute.xlu0 %580  ;;  %v704_v58 = vunpack.c.l.b16 %v660_v44 }
 0x1b9   :  { %v585_v27 = vpop.permute.xlu2 %584  ;;  %v630_v34 = vsel %vm529_vm8, %v587_v5, %v611_v55  ;;  %v928_v55 = vunpack.c.l.b16 %v887_v42  ;;  %v955_v42 = vunpack.c.l.b16 %v888_v18  ;;  %v541_v18 = vmul.f32 %v1827_v9, %v1923_v39  ;;  %v54_v9 = vld [vmem:[%s2138_s12] sm:$0xff] }
 0x1ba   :  { %v646_v45 = vmul.f32 %v630_v34, %v1902_v21 }
 0x1bb   :  { %v929_v28 = vpack.c.b16 %v928_v55, %v927_v22 }
 0x1bc   :  { %v654_v61 = vadd.f32 %v646_v45, %v638_v16  ;;  %v648_v45 = vmul.f32 %v632_v41, %v1902_v21 }
 0x1be   :  { %v662_v30 = vpack.c.bf16 %v654_v61, %v654_v61 }
 0x1c0   :  { %v605_v32 = vpop.permute.xlu1 %604  ;;  %v609_v33 = vpop.permute.xlu0 %608 }
 0x1c1   :  { %v627_v35 = vsel %vm529_vm8, %v581_v8, %v605_v32  ;;  %v629_v37 = vsel %vm529_vm8, %v585_v27, %v609_v33  ;;  %v613_v4 = vpop.permute.xlu2 %612  ;;  %v901_v27 = vpack.c.b16 %v900_v17, %v899_v20 }
 0x1c2   :  { %v643_v13 = vmul.f32 %v627_v35, %v1918_v36  ;;  %v645_v40 = vmul.f32 %v629_v37, %v1918_v36  ;;  %v468_v37 = vpop.f32.mrf.mxu3 }
 0x1c3   :  { %v890_v61 = vpack.c.bf16 %v468_v37, %v468_v37 }
 0x1c4   :  { %v651_v46 = vadd.f32 %v643_v13, %v635_v11  ;;  %v653_v49 = vadd.f32 %v645_v40, %v637_v38  ;;  %v956_v11 = vunpack.c.l.b16 %v889_v29  ;;  %v734_v38 = vunpack.c.l.b16 %v662_v30 }
 0x1c6   :  { %v659_v52 = vpack.c.bf16 %v651_v46, %v651_v46  ;;  %v661_v54 = vpack.c.bf16 %v653_v49, %v653_v49  ;;  %v957_v44 = vpack.c.b16 %v956_v11, %v955_v42  ;;  %v640_v49 = vmul.f32 %v1841_v14, %v1907_v23 }
 0x1c7   :  { %v539_v14 = vmul.f32 %v1818_v7, %v1923_v39 }
 0x1c8   :  { %v674_v5 = vunpack.c.l.b16 %v659_v52  ;;  %v705_v8 = vunpack.c.l.b16 %v661_v54  ;;  %v589_v10 = vpop.permute.xlu1 %588  ;;  %v1975_v32 = vpop.permute.xlu0 %485  ;;  %v656_v51 = vadd.f32 %v648_v45, %v640_v49 }
 0x1c9   :  { %v631_v1 = vsel %vm529_vm8, %v589_v10, %v613_v4  ;;  %v484_v46 = vpop.permute.xlu2 %483 }
 0x1ca   :  { %v647_v2 = vmul.f32 %v631_v1, %v1918_v36  ;;  %v675_v24 = vpack.c.b16 %v674_v5, %v673_v57  ;;  %v706_v26 = vpack.c.b16 %v705_v8, %v704_v58  ;;  %v470_v52 = vpop.f32.mrf.mxu3  ;;  %v664_v56 = vpack.c.bf16 %v656_v51, %v656_v51 }
 0x1cb   :  { %v891_v55 = vpack.c.bf16 %v470_v52, %v470_v52 }
 0x1cc   :  { %v655_v31 = vadd.f32 %v647_v2, %v639_v15  ;;  %v681_v33 = vsel %vm676_vm9, %v675_v24, 0  ;;  %v711_v34 = vsel %vm676_vm9, %v706_v26, 0  ;;  %v764_v19 = vunpack.c.l.b16 %v664_v56 }
 0x1cd   :  { %690 = vmatpush.bf16.xpose.msrb.mxu0 %v681_v33  ;;  %720 = vmatpush.bf16.xpose.msrb.mxu1 %v711_v34  ;;  %v984_v8 = vunpack.c.l.b16 %v891_v55  ;;  %v538_v15 = vmul.f32 %v1811_v3, %v1907_v23  ;;  %v983_v2 = vunpack.c.l.b16 %v890_v61 }
 0x1ce   :  { %v663_v35 = vpack.c.bf16 %v655_v31, %v655_v31 }
 0x1d0   :  { %v735_v13 = vunpack.c.l.b16 %v663_v35  ;;  %v593_v40 = vpop.permute.xlu1 %592  ;;  %v508_v50 = vpop.permute.xlu0 %507 }
 0x1d1   :  { %v531_v54 = vsel %vm529_vm8, %v484_v46, %v508_v50  ;;  %v506_v4 = vpop.permute.xlu2 %505 }
 0x1d2   :  { %v736_v43 = vpack.c.b16 %v735_v13, %v734_v38  ;;  %v547_v57 = vmul.f32 %v531_v54, %v1918_v36  ;;  %v540_v38 = vmul.f32 %v1816_v6, %v1907_v23  ;;  %v55_v6 = vld [vmem:[%s2138_s12 + $0x8] sm:$0xff] }
 0x1d4   :  { %v741_v25 = vsel %vm676_vm9, %v736_v43, 0  ;;  %v555_v10 = vadd.f32 %v547_v57, %v539_v14 }
 0x1d5   :  { %913 = vmatpush.bf16.msra.mxu0 %v901_v27  ;;  %941 = vmatpush.bf16.msra.mxu1 %v929_v28 }
 0x1d6   :  { %750 = vmatpush.bf16.xpose.msrb.mxu2 %v741_v25  ;;  %v563_v24 = vpack.c.bf16 %v555_v10, %v555_v10 }
 0x1d8   :  { %v617_v16 = vpop.permute.xlu1 %616  ;;  %v669_v28 = vunpack.c.l.b16 %v563_v24 }
 0x1d9   :  { %v633_v62 = vsel %vm529_vm8, %v593_v40, %v617_v16  ;;  %v512_v29 = vpop.permute.xlu2 %511 }
 0x1da   :  { %v649_v17 = vmul.f32 %v633_v62, %v1918_v36 }
 0x1dc   :  { %v657_v58 = vadd.f32 %v649_v17, %v641_v0 }
 0x1dd   :  { %1461 = vmatmul.msk.bf16.vlgmr.msrb.gmra.mxu2 %vm676_vm9, %v731_v53  ;;  %v985_v53 = vpack.c.b16 %v984_v8, %v983_v2 }
 0x1de   :  { %969 = vmatpush.bf16.msra.mxu2 %v957_v44  ;;  %v665_v5 = vpack.c.bf16 %v657_v58, %v657_v58 }
 0x1e0   :  { %v765_v20 = vunpack.c.l.b16 %v665_v5  ;;  %v482_v22 = vpop.permute.xlu1 %481 }
 0x1e1   :  { %v530_v1 = vsel %vm529_vm8, %v482_v22, %v506_v4 }
 0x1e2   :  { %v546_v47 = vmul.f32 %v530_v1, %v1902_v21  ;;  %v766_v48 = vpack.c.b16 %v765_v20, %v764_v19 }
 0x1e4   :  { %v554_v7 = vadd.f32 %v546_v47, %v538_v15  ;;  %v771_v26 = vsel %vm676_vm9, %v766_v48, 0 }
 0x1e5   :  { %780 = vmatpush.bf16.xpose.msrb.mxu3 %v771_v26 }
 0x1e6   :  { %v562_v27 = vpack.c.bf16 %v554_v7, %v554_v7 }
 0x1e8   :  { %v668_v30 = vunpack.c.l.b16 %v562_v27  ;;  %v488_v31 = vpop.permute.xlu1 %487 }
 0x1e9   :  { %v533_v33 = vsel %vm529_vm8, %v488_v31, %v512_v29 }
 0x1ea   :  { %v670_v34 = vpack.c.b16 %v669_v28, %v668_v30  ;;  %v549_v3 = vmul.f32 %v533_v33, %v1918_v36 }
 0x1ec   :  { %1459 = vmatmul.msk.bf16.vlgmr.msrb.gmra.mxu0 %vm676_vm9, %v670_v34  ;;  %1462 = vmatmul.msk.bf16.vlgmr.msrb.gmra.mxu3 %vm676_vm9, %v761_v63  ;;  %v557_v35 = vadd.f32 %v549_v3, %v541_v18 }
 0x1ed   :  { %997 = vmatpush.bf16.msra.mxu3 %v985_v53 }
 0x1ee   :  { %v565_v13 = vpack.c.bf16 %v557_v35, %v557_v35 }
 0x1f0   :  { %v510_v37 = vpop.permute.xlu1 %509  ;;  %v700_v42 = vunpack.c.l.b16 %v565_v13 }
 0x1f1   :  { %v532_v11 = vsel %vm529_vm8, %v1975_v32, %v510_v37 }
 0x1f2   :  { %v548_v36 = vmul.f32 %v532_v11, %v1902_v21 }
 0x1f4   :  { %v556_v40 = vadd.f32 %v548_v36, %v540_v38 }
 0x1f6   :  { %v564_v41 = vpack.c.bf16 %v556_v40, %v556_v40 }
 0x1f8   :  { %v699_v59 = vunpack.c.l.b16 %v564_v41 }
 0x1fa   :  { %v701_v60 = vpack.c.b16 %v700_v42, %v699_v59 }
 0x1fc   :  { %1460 = vmatmul.msk.bf16.vlgmr.msrb.gmra.mxu1 %vm676_vm9, %v701_v60 }
 0x260   :  { %v752_v39 = vpop.f32.mrf.mxu2 }
 0x261   :  { %v753_v63 = vadd.f32 %v752_v39, %v54_v9 }
 0x263   :  { %v800_v32 = vsel %vm787_vm10, %v753_v63, -inf }
 0x264   :  { %801 = vmax.xlane.f32.xlu0 %v800_v32 }
 0x268   :  { %v754_v21 = vpop.f32.mrf.mxu2 }
 0x269   :  { %v755_v23 = vadd.f32 %v754_v21, %v55_v6  ;;  %v692_v43 = vpop.f32.mrf.mxu0 }
 0x26a   :  { %v693_v16 = vadd.f32 %v692_v43, %v54_v9 }
 0x26b   :  { %v803_v44 = vsel %vm787_vm10, %v755_v23, -inf }
 0x26c   :  { %804 = vmax.xlane.f32.xlu1 %v803_v44  ;;  %v788_v17 = vsel %vm787_vm10, %v693_v16, -inf }
 0x26f   :  { %v782_v45 = vpop.f32.mrf.mxu3 }
 0x270   :  { %v783_v46 = vadd.f32 %v782_v45, %v54_v9 }
 0x271   :  { %v694_v25 = vpop.f32.mrf.mxu0 }
 0x272   :  { %v695_v49 = vadd.f32 %v694_v25, %v55_v6  ;;  %v806_v50 = vsel %vm787_vm10, %v783_v46, -inf }
 0x273   :  { %807 = vmax.xlane.f32.xlu2 %v806_v50 }
 0x274   :  { %v791_v51 = vsel %vm787_vm10, %v695_v49, -inf }
 0x275   :  { %792 = vmax.xlane.f32.xlu1 %v791_v51 }
 0x277   :  { %v784_v52 = vpop.f32.mrf.mxu3 }
 0x278   :  { %v785_v54 = vadd.f32 %v784_v52, %v55_v6 }
 0x279   :  { %v722_v62 = vpop.f32.mrf.mxu1 }
 0x27a   :  { %v809_v0 = vsel %vm787_vm10, %v785_v54, -inf  ;;  %v723_v55 = vadd.f32 %v722_v62, %v54_v9 }
 0x27b   :  { %810 = vmax.xlane.f32.xlu0 %v809_v0  ;;  %789 = vmax.xlane.f32.xlu2 %v788_v17 }
 0x27c   :  { %v794_v58 = vsel %vm787_vm10, %v723_v55, -inf }
 0x281   :  { %v724_v56 = vpop.f32.mrf.mxu1 }
 0x282   :  { %v725_v57 = vadd.f32 %v724_v56, %v55_v6 }
 0x283   :  { %795 = vmax.xlane.f32.xlu0 %v794_v58 }
 0x284   :  { %v797_v14 = vsel %vm787_vm10, %v725_v57, -inf }
 0x285   :  { %798 = vmax.xlane.f32.xlu2 %v797_v14 }
 0x2d7   :  { %v802_v61 = vpop.xlane.xlu0 %801 }
 0x2d8   :  { %v816_v4 = vsub.f32 %v753_v63, %v802_v61 }
 0x2da   :  { %v828_v5 = vmul.f32 1.442695, %v816_v4 }
 0x2dc   :  { %1554 = vpow2.f32 %v828_v5 }
 0x2df   :  { %v805_v8 = vpop.xlane.xlu1 %804 }
 0x2e0   :  { %v817_v19 = vsub.f32 %v755_v23, %v805_v8 }
 0x2e2   :  { %v1555_v10 = vpop.eup %1554  ;;  %v830_v20 = vmul.f32 1.442695, %v817_v19 }
 0x2e3   :  { %v848_v22 = vsel %vm787_vm10, %v1555_v10, 0.0 }
 0x2e4   :  { %1556 = vpow2.f32 %v830_v20  ;;  %849 = vadd.xlane.f32.xlu1 %v848_v22 }
 0x2e6   :  { %v808_v1 = vpop.xlane.xlu2 %807 }
 0x2e7   :  { %v818_v15 = vsub.f32 %v783_v46, %v808_v1 }
 0x2e8   :  { %v793_v2 = vpop.xlane.xlu1 %792 }
 0x2e9   :  { %v832_v48 = vmul.f32 1.442695, %v818_v15  ;;  %v813_v53 = vsub.f32 %v695_v49, %v793_v2 }
 0x2ea   :  { %v1557_v47 = vpop.eup %1556 }
 0x2eb   :  { %v851_v24 = vsel %vm787_vm10, %v1557_v47, 0.0  ;;  %1558 = vpow2.f32 %v832_v48  ;;  %v822_v7 = vmul.f32 1.442695, %v813_v53 }
 0x2ec   :  { %852 = vadd.xlane.f32.xlu0 %v851_v24 }
 0x2ed   :  { %1560 = vpow2.f32 %v822_v7 }
 0x2ee   :  { %v811_v26 = vpop.xlane.xlu0 %810  ;;  %v790_v27 = vpop.xlane.xlu2 %789 }
 0x2ef   :  { %v819_v28 = vsub.f32 %v785_v54, %v811_v26  ;;  %v812_v29 = vsub.f32 %v693_v16, %v790_v27 }
 0x2f1   :  { %v1559_v30 = vpop.eup %1558  ;;  %v834_v31 = vmul.f32 1.442695, %v819_v28  ;;  %v820_v33 = vmul.f32 1.442695, %v812_v29 }
 0x2f2   :  { %v854_v34 = vsel %vm787_vm10, %v1559_v30, 0.0 }
 0x2f3   :  { %1562 = vpow2.f32 %v834_v31  ;;  %855 = vadd.xlane.f32.xlu2 %v854_v34  ;;  %v1561_v18 = vpop.eup %1560  ;;  %v1014_v31 = vld [vmem:[%s2132_s6 + $0x8] sm:$0xf]  ;;  %v1012_v34 = vld [vmem:[%s2132_s6] sm:$0xf] }
 0x2f4   :  { %1564 = vpow2.f32 %v820_v33  ;;  %v839_v41 = vsel %vm787_vm10, %v1561_v18, 0.0  ;;  %v1076_v33 = vsel %vm1024_vm11, %v1014_v31, 0 }
 0x2f5   :  { %1085 = vmatpush.bf16.msrb.mxu2 %v1076_v33 }
 0x2f6   :  { %v796_v3 = vpop.xlane.xlu0 %795 }
 0x2f7   :  { %v814_v35 = vsub.f32 %v723_v55, %v796_v3  ;;  %v1026_v3 = vsel %vm1024_vm11, %v1012_v34, 0 }
 0x2f8   :  { %v799_v37 = vpop.xlane.xlu2 %798  ;;  %1035 = vmatpush.bf16.msrb.mxu0 %v1026_v3  ;;  %v1533_v3 = vld [vmem:[%s2133_s7 + $0x8] sm:$0xff] }
 0x2f9   :  { %v1563_v11 = vpop.eup %1562  ;;  %v824_v38 = vmul.f32 1.442695, %v814_v35  ;;  %v815_v36 = vsub.f32 %v725_v57, %v799_v37  ;;  %v1013_v37 = vld [vmem:[%s2132_s6 + $0x4] sm:$0xf] }
 0x2fa   :  { %v1565_v13 = vpop.eup %1564  ;;  %v857_v40 = vsel %vm787_vm10, %v1563_v11, 0.0 }
 0x2fb   :  { %1566 = vpow2.f32 %v824_v38  ;;  %v826_v42 = vmul.f32 1.442695, %v815_v36  ;;  %858 = vadd.xlane.f32.xlu1 %v857_v40  ;;  %840 = vadd.xlane.f32.xlu2 %v839_v41  ;;  %v836_v59 = vsel %vm787_vm10, %v1565_v13, 0.0 }
 0x2fc   :  { %837 = vadd.xlane.f32.xlu0 %v836_v59 }
 0x2fd   :  { %1568 = vpow2.f32 %v826_v42 }
 0x301   :  { %v1567_v60 = vpop.eup %1566 }
 0x302   :  { %v842_v9 = vsel %vm787_vm10, %v1567_v60, 0.0 }
 0x303   :  { %v1569_v39 = vpop.eup %1568  ;;  %843 = vadd.xlane.f32.xlu1 %v842_v9 }
 0x304   :  { %v845_v63 = vsel %vm787_vm10, %v1569_v39, 0.0 }
 0x305   :  { %846 = vadd.xlane.f32.xlu0 %v845_v63 }
 0x357   :  { %v850_v32 = vpop.xlane.xlu1 %849 }
 0x358   :  { %1570 = vrcp.f32 %v850_v32 }
 0x35e   :  { %v1571_v21 = vpop.eup %1570 }
 0x35f   :  { %v853_v6 = vpop.xlane.xlu0 %852  ;;  %v872_v23 = vmul.f32 %v1571_v21, %v1555_v10 }
 0x360   :  { %1572 = vrcp.f32 %v853_v6 }
 0x361   :  { %v880_v44 = vpack.c.bf16 %v872_v23, %v872_v23 }
 0x363   :  { %v950_v49 = vunpack.c.l.b16 %v880_v44 }
 0x366   :  { %v1573_v43 = vpop.eup %1572  ;;  %v856_v46 = vpop.xlane.xlu2 %855 }
 0x367   :  { %v873_v45 = vmul.f32 %v1573_v43, %v1557_v47  ;;  %1574 = vrcp.f32 %v856_v46 }
 0x369   :  { %v881_v25 = vpack.c.bf16 %v873_v45, %v873_v45 }
 0x36b   :  { %v951_v50 = vunpack.c.l.b16 %v881_v25 }
 0x36d   :  { %v952_v51 = vpack.c.b16 %v951_v50, %v950_v49  ;;  %v1575_v54 = vpop.eup %1574 }
 0x36e   :  { %v859_v16 = vpop.xlane.xlu1 %858  ;;  %v841_v52 = vpop.xlane.xlu2 %840  ;;  %v874_v0 = vmul.f32 %v1575_v54, %v1559_v30 }
 0x36f   :  { %1465 = vmatmul.msk.bf16.vlgmr.msra.gmra.mxu2 %vm787_vm10, %v952_v51  ;;  %1576 = vrcp.f32 %v859_v16  ;;  %v838_v62 = vpop.xlane.xlu0 %837 }
 0x370   :  { %1578 = vrcp.f32 %v838_v62  ;;  %v882_v56 = vpack.c.bf16 %v874_v0, %v874_v0 }
 0x371   :  { %1580 = vrcp.f32 %v841_v52 }
 0x372   :  { %v978_v10 = vunpack.c.l.b16 %v882_v56 }
 0x375   :  { %v1577_v17 = vpop.eup %1576 }
 0x376   :  { %v1579_v55 = vpop.eup %1578  ;;  %v875_v57 = vmul.f32 %v1577_v17, %v1563_v11  ;;  %v844_v58 = vpop.xlane.xlu1 %843  ;;  %v1051_v11 = vsel %vm1024_vm11, %v1013_v37, 0 }
 0x377   :  { %v1581_v14 = vpop.eup %1580  ;;  %v868_v61 = vmul.f32 %v1579_v55, %v1565_v13  ;;  %1582 = vrcp.f32 %v844_v58  ;;  %1060 = vmatpush.bf16.msrb.mxu1 %v1051_v11  ;;  %v1532_v11 = vld [vmem:[%s2133_s7] sm:$0xff] }
 0x378   :  { %v883_v4 = vpack.c.bf16 %v875_v57, %v875_v57  ;;  %v869_v5 = vmul.f32 %v1581_v14, %v1561_v18  ;;  %v847_v8 = vpop.xlane.xlu0 %846  ;;  %v1015_v18 = vld [vmem:[%s2132_s6 + $0xc] sm:$0xf] }
 0x379   :  { %v876_v19 = vpack.c.bf16 %v868_v61, %v868_v61  ;;  %1584 = vrcp.f32 %v847_v8  ;;  %v1101_v35 = vsel %vm1024_vm11, %v1015_v18, 0  ;;  %v1535_v18 = vld [vmem:[%s2134_s8 + $0x8] sm:$0xff]  ;;  %vm1311_vm11 = vcmask 523264  }
 0x37a   :  { %v979_v20 = vunpack.c.l.b16 %v883_v4  ;;  %v877_v22 = vpack.c.bf16 %v869_v5, %v869_v5  ;;  %1110 = vmatpush.bf16.msrb.mxu3 %v1101_v35 }
 0x37b   :  { %v894_v1 = vunpack.c.l.b16 %v876_v19 }
 0x37c   :  { %v980_v15 = vpack.c.b16 %v979_v20, %v978_v10  ;;  %v895_v2 = vunpack.c.l.b16 %v877_v22  ;;  %v1598_v22 = vld [vmem:[%s2126_s0] sm:$0xff] }
 0x37d   :  { %v1583_v47 = vpop.eup %1582 }
 0x37e   :  { %v896_v48 = vpack.c.b16 %v895_v2, %v894_v1  ;;  %v870_v53 = vmul.f32 %v1583_v47, %v1567_v60  ;;  %1466 = vmatmul.msk.bf16.vlgmr.msra.gmra.mxu3 %vm787_vm10, %v980_v15 }
 0x37f   :  { %v1585_v24 = vpop.eup %1584 }
 0x380   :  { %v878_v7 = vpack.c.bf16 %v870_v53, %v870_v53  ;;  %v871_v26 = vmul.f32 %v1585_v24, %v1569_v39  ;;  %1463 = vmatmul.msk.bf16.vlgmr.msra.gmra.mxu0 %vm787_vm10, %v896_v48 }
 0x381   :  { %1198 = vmatpush.bf16.msra.mxu0 %v1533_v3 }
 0x382   :  { %v879_v27 = vpack.c.bf16 %v871_v26, %v871_v26  ;;  %v922_v28 = vunpack.c.l.b16 %v878_v7 }
 0x384   :  { %v923_v29 = vunpack.c.l.b16 %v879_v27 }
 0x385   :  { %1199 = vmatpush.bf16.msra.mxu0 %v1532_v11 }
 0x386   :  { %v924_v30 = vpack.c.b16 %v923_v29, %v922_v28 }
 0x388   :  { %1464 = vmatmul.msk.bf16.vlgmr.msra.gmra.mxu1 %vm787_vm10, %v924_v30  ;;  %v1599_v30 = vld [vmem:[%s2126_s0 + $0x8] sm:$0xff] }
 0x389   :  { %1228 = vmatpush.bf16.msra.mxu1 %v1535_v18 }
 0x3f2   :  { %v971_v38 = vpop.f32.mrf.mxu2 }
 0x3f3   :  { %v1008_v36 = vpack.c.bf16 %v971_v38, %v971_v38  ;;  %v1534_v38 = vld [vmem:[%s2134_s8] sm:$0xff] }
 0x3f4   :  { %1229 = vmatpush.bf16.msra.mxu1 %v1534_v38 }
 0x3f5   :  { %v1069_v41 = vunpack.c.l.b16 %v1008_v36 }
 0x3fa   :  { %v973_v13 = vpop.f32.mrf.mxu2 }
 0x3fb   :  { %v1009_v40 = vpack.c.bf16 %v973_v13, %v973_v13 }
 0x3fd   :  { %v1070_v42 = vunpack.c.l.b16 %v1009_v40  ;;  %v915_v59 = vpop.f32.mrf.mxu0 }
 0x3fe   :  { %v1004_v39 = vpack.c.bf16 %v915_v59, %v915_v59 }
 0x3ff   :  { %v1071_v60 = vpack.c.b16 %v1070_v42, %v1069_v41 }
 0x400   :  { %v1018_v21 = vunpack.c.l.b16 %v1004_v39 }
 0x401   :  { %1469 = vmatmul.msk.bf16.vlgmr.msrb.gmra.mxu2 %vm676_vm9, %v1071_v60  ;;  %v999_v9 = vpop.f32.mrf.mxu3 }
 0x402   :  { %v1010_v23 = vpack.c.bf16 %v999_v9, %v999_v9 }
 0x404   :  { %v1094_v25 = vunpack.c.l.b16 %v1010_v23 }
 0x405   :  { %v917_v63 = vpop.f32.mrf.mxu0  ;;  %v943_v32 = vpop.f32.mrf.mxu1 }
 0x406   :  { %v1005_v6 = vpack.c.bf16 %v917_v63, %v917_v63  ;;  %v1006_v49 = vpack.c.bf16 %v943_v32, %v943_v32 }
 0x408   :  { %v1019_v43 = vunpack.c.l.b16 %v1005_v6  ;;  %v1044_v54 = vunpack.c.l.b16 %v1006_v49 }
 0x409   :  { %v1001_v44 = vpop.f32.mrf.mxu3 }
 0x40a   :  { %v1020_v45 = vpack.c.b16 %v1019_v43, %v1018_v21  ;;  %v1011_v46 = vpack.c.bf16 %v1001_v44, %v1001_v44 }
 0x40c   :  { %v1095_v50 = vunpack.c.l.b16 %v1011_v46  ;;  %1467 = vmatmul.msk.bf16.vlgmr.msrb.gmra.mxu0 %vm676_vm9, %v1020_v45 }
 0x40d   :  { %v945_v51 = vpop.f32.mrf.mxu1 }
 0x40e   :  { %v1096_v16 = vpack.c.b16 %v1095_v50, %v1094_v25  ;;  %v1007_v52 = vpack.c.bf16 %v945_v51, %v945_v51 }
 0x410   :  { %v1045_v62 = vunpack.c.l.b16 %v1007_v52  ;;  %1470 = vmatmul.msk.bf16.vlgmr.msrb.gmra.mxu3 %vm676_vm9, %v1096_v16  ;;  %v1539_v52 = vld [vmem:[%s2135_s9 + $0x18] sm:$0xff] }
 0x411   :  { %1319 = vmatpush.bf16.msra.mxu2 %v1539_v52 }
 0x412   :  { %v1046_v0 = vpack.c.b16 %v1045_v62, %v1044_v54  ;;  %v1538_v62 = vld [vmem:[%s2135_s9 + $0x10] sm:$0xff] }
 0x414   :  { %1468 = vmatmul.msk.bf16.vlgmr.msrb.gmra.mxu1 %vm676_vm9, %v1046_v0 }
 0x415   :  { %1320 = vmatpush.bf16.msra.mxu2 %v1538_v62 }
 0x484   :  { %v1087_v55 = vpop.f32.mrf.mxu2 }
 0x485   :  { %v1120_v4 = vsel %vm58_vm0, %v1087_v55, 0.0 }
 0x489   :  { %v1037_v17 = vpop.f32.mrf.mxu0 }
 0x48a   :  { %v1117_v57 = vsel %vm58_vm0, %v1037_v17, 0.0  ;;  %v1537_v17 = vld [vmem:[%s2135_s9 + $0x8] sm:$0xff] }
 0x48b   :  { %1321 = vmatpush.bf16.msra.mxu2 %v1537_v17 }
 0x48c   :  { %v1089_v20 = vpop.f32.mrf.mxu2 }
 0x48d   :  { %v1127_v7 = vsel %vm58_vm0, %v1089_v20, 0.0 }
 0x491   :  { %v1062_v56 = vpop.f32.mrf.mxu1  ;;  %v1039_v19 = vpop.f32.mrf.mxu0 }
 0x492   :  { %v1118_v58 = vsel %vm58_vm0, %v1062_v56, 0.0  ;;  %v1124_v2 = vsel %vm58_vm0, %v1039_v19, 0.0  ;;  %v1536_v56 = vld [vmem:[%s2135_s9] sm:$0xff]  ;;  %s1629_s9 = smov [#allocation2]  }
 0x493   :  { %v1119_v14 = vadd.f32 %v1118_v58, %v1117_v57  ;;  %v1112_v61 = vpop.f32.mrf.mxu3  ;;  %1322 = vmatpush.bf16.msra.mxu2 %v1536_v56  ;;  %s1337_s16 = sshll.u32 %s1629_s9, 4  ;;  %s1338_s16 = int_to_ptr.vmem [resolvable:$true] %s1337_s16 }
 0x494   :  { %v1122_v8 = vsel %vm58_vm0, %v1112_v61, 0.0 }
 0x495   :  { %v1121_v5 = vadd.f32 %v1120_v4, %v1119_v14 }
 0x497   :  { %v1123_v10 = vadd.f32 %v1122_v8, %v1121_v5 }
 0x499   :  { %v2069_v1 = vadd.f32 %v1598_v22, %v1123_v10  ;;  %v1064_v15 = vpop.f32.mrf.mxu1 }
 0x49a   :  { %v1125_v47 = vsel %vm58_vm0, %v1064_v15, 0.0 }
 0x49b   :  { %v1126_v48 = vadd.f32 %v1125_v47, %v1124_v2  ;;  %v1114_v53 = vpop.f32.mrf.mxu3  ;;  %v1133_v24 = vmul.f32 %v2069_v1, %v2069_v1 }
 0x49c   :  { %v1129_v28 = vsel %vm58_vm0, %v1114_v53, 0.0 }
 0x49d   :  { %v1128_v26 = vadd.f32 %v1127_v7, %v1126_v48  ;;  %v1135_v27 = vsel %vm58_vm0, %v1133_v24, 0.0 }
 0x49e   :  { %1136 = vadd.xlane.f32.xlu2 %v1135_v27 }
 0x49f   :  { %v1130_v29 = vadd.f32 %v1129_v28, %v1128_v26 }
 0x4a1   :  { %v2081_v31 = vadd.f32 %v1599_v30, %v1130_v29 }
 0x4a3   :  { %v1134_v33 = vmul.f32 %v2081_v31, %v2081_v31 }
 0x4a5   :  { %v1138_v34 = vsel %vm58_vm0, %v1134_v33, 0.0 }
 0x4a6   :  { %1139 = vadd.xlane.f32.xlu1 %v1138_v34 }
 0x511   :  { %v1137_v35 = vpop.xlane.xlu2 %1136 }
 0x512   :  { %v1141_v37 = vmul.f32 %v1137_v35, %v1718_v12 }
 0x514   :  { %v1143_v36 = vadd.f32 1e-05, %v1141_v37 }
 0x516   :  { %1586 = vrsqrt.f32 %v1143_v36  ;;  %vm1151_vm13 = vweird.f32 %v1143_v36 }
 0x519   :  { %v1140_v13 = vpop.xlane.xlu1 %1139 }
 0x51a   :  { %v1142_v40 = vmul.f32 %v1140_v13, %v1718_v12  ;;  %v1547_v12 = vld [vmem:[%s2128_s2] ss:$0 sm:$0xff] }
 0x51c   :  { %v1587_v41 = vpop.eup %1586  ;;  %v1144_v42 = vadd.f32 1e-05, %v1142_v40 }
 0x51d   :  { %v1146_v59 = vmul.f32 %v1587_v41, %v1143_v36  ;;  %vm1152_vm12 = vweird.f32 %v1587_v41 }
 0x51e   :  { %1588 = vrsqrt.f32 %v1144_v42  ;;  %vm1153_vm14 = vmor %vm1151_vm13, %vm1152_vm12  ;;  %vm1161_vm1 = vweird.f32 %v1144_v42 }
 0x51f   :  { %v1147_v60 = vmul.f32 %v1587_v41, %v1146_v59 }
 0x521   :  { %v1148_v9 = vmul.f32 0.5, %v1147_v60 }
 0x523   :  { %v1149_v39 = vsub.f32 1.5, %v1148_v9 }
 0x524   :  { %v1589_v63 = vpop.eup %1588 }
 0x525   :  { %v1156_v32 = vmul.f32 %v1589_v63, %v1144_v42  ;;  %v1150_v6 = vmul.f32 %v1587_v41, %v1149_v39  ;;  %vm1162_vm15 = vweird.f32 %v1589_v63 }
 0x526   :  { %vm1163_vm2 = vmor %vm1161_vm1, %vm1162_vm15 }
 0x527   :  { %v1157_v21 = vmul.f32 %v1589_v63, %v1156_v32  ;;  %v1154_v43 = vsel %vm1153_vm14, %v1587_v41, %v1150_v6 }
 0x528   :  { %v1165_v46 = vmul.f32 %v1154_v43, %v2069_v1 }
 0x529   :  { %v1158_v23 = vmul.f32 0.5, %v1157_v21 }
 0x52a   :  { %v1170_v50 = vmul.f32 %v1547_v12, %v1165_v46 }
 0x52b   :  { %v1159_v44 = vsub.f32 1.5, %v1158_v23 }
 0x52d   :  { %v1160_v45 = vmul.f32 %v1589_v63, %v1159_v44 }
 0x52f   :  { %v1164_v25 = vsel %vm1163_vm2, %v1589_v63, %v1160_v45 }
 0x530   :  { %v1166_v49 = vmul.f32 %v1164_v25, %v2081_v31 }
 0x532   :  { %v1171_v51 = vmul.f32 %v1547_v12, %v1166_v49 }
 0x534   :  { %v1172_v16 = vpack.c.bf16 %v1171_v51, %v1170_v50 }
 0x536   :  { %1479 = vmatmul.msk.bf16.vlgmr.msra.gmra.mxu0 %vm58_vm0, %v1172_v16  ;;  %1488 = vmatmul.msk.bf16.vlgmr.msra.gmra.mxu1 %vm58_vm0, %v1172_v16 }
 0x5b3   :  { %v1201_v54 = vpop.f32.mrf.mxu0  ;;  %v1231_v48 = vpop.f32.mrf.mxu1 }
 0x5b4   :  { %v1489_v0 = vmul.f32 -1.442695, %v1201_v54 }
 0x5b6   :  { %1590 = vpow2.f32 %v1489_v0 }
 0x5bb   :  { %v1203_v55 = vpop.f32.mrf.mxu0  ;;  %v1233_v37 = vpop.f32.mrf.mxu1 }
 0x5bc   :  { %v1591_v57 = vpop.eup %1590  ;;  %v1490_v58 = vmul.f32 -1.442695, %v1203_v55 }
 0x5bd   :  { %v1242_v14 = vadd.f32 1.0, %v1591_v57 }
 0x5be   :  { %1592 = vpow2.f32 %v1490_v58 }
 0x5bf   :  { %1594 = vrcp.f32 %v1242_v14  ;;  %v1255_v15 = vand.u32 2147483648, %v1242_v14  ;;  %vm1249_vm4 = vweird.f32 %v1242_v14  ;;  %v1253_v2 = vand.u32 2147483647, %v1242_v14 }
 0x5c1   :  { %v1256_v7 = vor.u32 1.1754944e-38, %v1255_v15  ;;  %vm1254_vm6 = vcmp.eq.f32.partialorder %v1253_v2, 8.507059e+37 }
 0x5c4   :  { %v1593_v61 = vpop.eup %1592 }
 0x5c5   :  { %v1595_v4 = vpop.eup %1594  ;;  %v1243_v5 = vadd.f32 1.0, %v1593_v61 }
 0x5c6   :  { %v1245_v8 = vmul.f32 %v1595_v4, %v1242_v14  ;;  %vm1250_vm3 = vweird.f32 %v1595_v4 }
 0x5c7   :  { %1596 = vrcp.f32 %v1243_v5  ;;  %vm1251_vm5 = vmor %vm1249_vm4, %vm1250_vm3  ;;  %v1270_v26 = vand.u32 2147483648, %v1243_v5  ;;  %v1268_v28 = vand.u32 2147483647, %v1243_v5  ;;  %vm1264_vm8 = vweird.f32 %v1243_v5 }
 0x5c8   :  { %v1246_v19 = vsub.f32 1.0, %v1245_v8 }
 0x5c9   :  { %v1271_v33 = vor.u32 1.1754944e-38, %v1270_v26  ;;  %vm1269_vm10 = vcmp.eq.f32.partialorder %v1268_v28, 8.507059e+37 }
 0x5ca   :  { %v1247_v10 = vmul.f32 %v1595_v4, %v1246_v19 }
 0x5cc   :  { %v1248_v20 = vadd.f32 %v1595_v4, %v1247_v10 }
 0x5cd   :  { %v1597_v22 = vpop.eup %1596 }
 0x5ce   :  { %v1260_v47 = vmul.f32 %v1597_v22, %v1243_v5  ;;  %v1252_v53 = vsel %vm1251_vm5, %v1595_v4, %v1248_v20  ;;  %vm1265_vm7 = vweird.f32 %v1597_v22 }
 0x5cf   :  { %v1257_v29 = vsel %vm1254_vm6, %v1256_v7, %v1252_v53  ;;  %vm1266_vm9 = vmor %vm1264_vm8, %vm1265_vm7 }
 0x5d0   :  { %v1261_v24 = vsub.f32 1.0, %v1260_v47  ;;  %v1274_v34 = vmul.f32 %v1257_v29, %v1201_v54 }
 0x5d2   :  { %v1262_v27 = vmul.f32 %v1597_v22, %v1261_v24  ;;  %v1276_v11 = vmul.f32 %v1274_v34, %v1231_v48 }
 0x5d4   :  { %v1263_v30 = vadd.f32 %v1597_v22, %v1262_v27 }
 0x5d6   :  { %v1267_v3 = vsel %vm1266_vm9, %v1597_v22, %v1263_v30 }
 0x5d7   :  { %v1272_v18 = vsel %vm1269_vm10, %v1271_v33, %v1267_v3 }
 0x5d8   :  { %v1275_v35 = vmul.f32 %v1272_v18, %v1203_v55 }
 0x5da   :  { %v1277_v38 = vmul.f32 %v1275_v35, %v1233_v37 }
 0x5dc   :  { %v1278_v36 = vpack.c.bf16 %v1277_v38, %v1276_v11 }
 0x5de   :  { %1507 = vmatmul.msk.bf16.vlgmr.msra.gmra.mxu2 %vm1311_vm11, %v1278_v36 }
 0x661   :  { %v1324_v13 = vpop.f32.mrf.mxu2 }
 0x662   :  { %v1329_v40 = vadd.f32 %v1324_v13, %v2069_v1 }
 0x664   :  { %1331 = vst.msk [vmem:[#allocation2] sm:$0xff] %vm58_vm0, %v1329_v40 }
 0x669   :  { %v1326_v41 = vpop.f32.mrf.mxu2 }
 0x66a   :  { %v1330_v42 = vadd.f32 %v1326_v41, %v2081_v31 }
 0x66c   :  { %1332 = vst.msk [vmem:[#allocation2 + $0x8] sm:$0xff] %vm58_vm0, %v1330_v42 }
 0x66d   :  { %1345 = dma.vmem_to_hbm [thread:$0]  %s1338_s16, 256, %s1340_s18, [#allocation3], %s1630_s19, %s1630_s19, %s1631_s20  }
 0x66e   :  { %1624 = dma.done.wait [#allocation3], 256  }
 0x66f   :  { %1625 = vsyncadd [#allocation3], 4294967040 }
 0x670   :  { %1350 = vsyncpa [#allocation3], 1 }

</bundles_post_ra>
